<compile_context>
chip_gen: v7x
topology: tpu7x:2x2x1
jax: 0.10.0
libtpu: 0.0.40
codegen_flags: <defaults>
</compile_context>

<pallas_src>
import functools

import jax
import jax.numpy as jnp
from jax.experimental import pallas as pl
from jax.experimental.pallas import tpu as pltpu


def _round_up(n: int, m: int) -> int:
    return ((n + m - 1) // m) * m


def mlp_kernel(x_ref, w1_ref, b1_ref, w2_ref, b2_ref, o_ref):
    # fc1 + ReLU: MXU matmul with f32 accumulation; bias add / ReLU on the VPU in f32.
    h = jnp.dot(x_ref[...], w1_ref[...], preferred_element_type=jnp.float32)
    h = jnp.maximum(h + b1_ref[...], 0.0)
    # fc2 + Tanh: cast the activation to the weight dtype (no-op in f32 mode) so the
    # second matmul also takes the bf16 MXU path when enabled; tanh goes to the EUP.
    y = jnp.dot(h.astype(w2_ref.dtype), w2_ref[...], preferred_element_type=jnp.float32)
    o_ref[...] = jnp.tanh(y + b2_ref[...]).astype(o_ref.dtype)


@functools.partial(jax.jit, static_argnames=("block_b", "use_bf16"))
def delta_estimator_mlp(x, w1, b1, w2, b2, *, block_b: int = 1024, use_bf16: bool = False):
    """y = tanh(relu(x @ w1 + b1) @ w2 + b2), fused on TPU."""
    B, K = x.shape
    H = w1.shape[1]
    O = w2.shape[1]
    out_dtype = x.dtype

    # Pad ONLY the hidden dim of the tiny, VMEM-resident weights/biases so the hidden
    # activation is lane-dense.  Exact: padded hidden lanes see zero w1 columns / zero
    # b1 and zero w2 rows, so they contribute nothing to the output.
    # TODO(synk): for large hidden sizes on v6e/v7x, align Hp to 256 (MXU is 256x256).
    Hp = _round_up(H, 128)
    w1_p = jnp.pad(w1, ((0, 0), (0, Hp - H)))
    b1_p = jnp.pad(b1, ((0, 0), (0, Hp - H)))
    w2_p = jnp.pad(w2, ((0, Hp - H), (0, 0)))

    if use_bf16:
        # bf16 MXU operands (v6e/v7x fast path; halves the x HBM read).  Accumulation,
        # biases and elementwise stay f32 (important on v5e: no bf16 VPU/EUP).
        x_in = x.astype(jnp.bfloat16)
        w1_in = w1_p.astype(jnp.bfloat16)
        w2_in = w2_p.astype(jnp.bfloat16)
    else:
        x_in, w1_in, w2_in = x, w1_p, w2_p

    # Batch tile: multiple of 8 sublanes, large enough to amortize per-grid-step
    # overhead, capped so the grid keeps >= 2 steps (v7x has 2 TensorCores and the
    # batch axis is "parallel").  The ragged last tile is masked by Pallas.
    TB = min(_round_up(block_b, 8), _round_up(pl.cdiv(B, 2), 8))
    grid = (pl.cdiv(B, TB),)

    itemsize = jnp.dtype(x_in.dtype).itemsize
    cost = pl.CostEstimate(
        flops=2 * B * (K * Hp + Hp * O),
        transcendentals=B * O,
        bytes_accessed=(B * K + K * Hp + Hp * O) * itemsize
        + (Hp + O) * 4
        + B * O * jnp.dtype(out_dtype).itemsize,
    )

    # NOTE: the weight/bias specs have constant index_maps, so their blocks stay
    # resident across the batch grid; their double buffers cost <40 KiB of VMEM here.
    # TODO(synk): single-buffer (pipeline_mode=pl.Buffered(1)) the resident operands
    # if input/hidden sizes ever grow enough for VMEM to matter.
    out = pl.pallas_call(
        mlp_kernel,
        out_shape=jax.ShapeDtypeStruct((B, O), out_dtype),
        grid_spec=pltpu.PrefetchScalarGridSpec(
            num_scalar_prefetch=0,
            grid=grid,
            in_specs=[
                pl.BlockSpec((TB, K), lambda i: (i, 0)),   # x: batch-tiled, unpadded K
                pl.BlockSpec((K, Hp), lambda i: (0, 0)),   # w1: resident
                pl.BlockSpec((1, Hp), lambda i: (0, 0)),   # b1: resident
                pl.BlockSpec((Hp, O), lambda i: (0, 0)),   # w2: resident
                pl.BlockSpec((1, O), lambda i: (0, 0)),    # b2: resident
            ],
            out_specs=pl.BlockSpec((TB, O), lambda i: (i, 0)),  # unpadded O = full last dim
        ),
        compiler_params=pltpu.CompilerParams(
            dimension_semantics=("parallel",),
        ),
        cost_estimate=cost,
    )(x_in, w1_in, b1_p, w2_in, b2)

    return out


def init_params(key, input_size, hidden_size, output_size):
    # Deterministic init matching nn.Linear's uniform(-1/sqrt(fan_in), 1/sqrt(fan_in)).
    k1, k2, k3, k4 = jax.random.split(key, 4)
    bound1 = 1.0 / jnp.sqrt(jnp.float32(input_size))
    bound2 = 1.0 / jnp.sqrt(jnp.float32(hidden_size))
    w1 = jax.random.uniform(k1, (input_size, hidden_size), jnp.float32, -bound1, bound1)
    b1 = jax.random.uniform(k2, (1, hidden_size), jnp.float32, -bound1, bound1)
    w2 = jax.random.uniform(k3, (hidden_size, output_size), jnp.float32, -bound2, bound2)
    b2 = jax.random.uniform(k4, (1, output_size), jnp.float32, -bound2, bound2)
    return w1, b1, w2, b2


def reference(x, w1, b1, w2, b2):
    h = jnp.maximum(x @ w1 + b1, 0.0)
    return jnp.tanh(h @ w2 + b2)


if __name__ == "__main__":
    input_size, hidden_size, output_size = 16, 32, 8
    batch = 8

    key = jax.random.PRNGKey(0)
    kx, kp = jax.random.split(key)
    x = jax.random.normal(kx, (batch, input_size), jnp.float32)
    w1, b1, w2, b2 = init_params(kp, input_size, hidden_size, output_size)

    out = jax.block_until_ready(delta_estimator_mlp(x, w1, b1, w2, b2))
    ref = reference(x, w1, b1, w2, b2)
    assert out.shape == (batch, output_size)
    assert jnp.allclose(out, ref, atol=1e-5, rtol=1e-5)

    # Larger batch: exercises the multi-step "parallel" grid / double-buffered DMA path.
    x_big = jax.random.normal(jax.random.PRNGKey(1), (1024, input_size), jnp.float32)
    out_big = jax.block_until_ready(delta_estimator_mlp(x_big, w1, b1, w2, b2))
    ref_big = reference(x_big, w1, b1, w2, b2)
    assert out_big.shape == (1024, output_size)
    assert jnp.allclose(out_big, ref_big, atol=1e-5, rtol=1e-5)

    # Ragged batch: exercises the cdiv grid with a masked partial last tile.
    x_rag = jax.random.normal(jax.random.PRNGKey(2), (1000, input_size), jnp.float32)
    out_rag = jax.block_until_ready(delta_estimator_mlp(x_rag, w1, b1, w2, b2))
    ref_rag = reference(x_rag, w1, b1, w2, b2)
    assert out_rag.shape == (1000, output_size)
    assert jnp.allclose(out_rag, ref_rag, atol=1e-5, rtol=1e-5)

    # bf16 matmul-operand fast path (v6e/v7x); f32 accumulation/elementwise, looser tol.
    out_bf16 = jax.block_until_ready(
        delta_estimator_mlp(x_big, w1, b1, w2, b2, use_bf16=True)
    )
    assert out_bf16.shape == (1024, output_size)
    assert jnp.allclose(out_bf16, ref_big, atol=5e-2, rtol=5e-2)

    print("KERNEL_OK")
</pallas_src>

<mosaic_0001>
module attributes {stable_mosaic.version = 11 : i64} {
  func.func @mlp_kernel(%arg0: i32, %arg1: memref<8x16xf32, #tpu.memory_space<vmem>>, %arg2: memref<16x128xf32, #tpu.memory_space<vmem>>, %arg3: memref<1x128xf32, #tpu.memory_space<vmem>>, %arg4: memref<128x8xf32, #tpu.memory_space<vmem>>, %arg5: memref<1x8xf32, #tpu.memory_space<vmem>>, %arg6: memref<8x8xf32, #tpu.memory_space<vmem>>) attributes {dimension_semantics = [#tpu.dimension_semantics<parallel>], iteration_bounds = array<i64: 1>, scalar_prefetch = 0 : i64, scratch_operands = 0 : i64, tpu.core_type = #tpu.core_type<tc>, window_params = [{transform_indices = @transform_0, window_bounds = array<i64: 8, 16>}, {pipeline_mode = #tpu.pipeline_mode<synchronous>, transform_indices = @transform_1, window_bounds = array<i64: 16, 128>}, {pipeline_mode = #tpu.pipeline_mode<synchronous>, transform_indices = @transform_2, window_bounds = array<i64: 1, 128>}, {pipeline_mode = #tpu.pipeline_mode<synchronous>, transform_indices = @transform_3, window_bounds = array<i64: 128, 8>}, {pipeline_mode = #tpu.pipeline_mode<synchronous>, transform_indices = @transform_4, window_bounds = array<i64: 1, 8>}, {transform_indices = @transform_5, window_bounds = array<i64: 8, 8>}]} {
    %c0 = arith.constant 0 : index
    %c0_0 = arith.constant 0 : index
    %0 = vector.load %arg1[%c0, %c0_0] : memref<8x16xf32, #tpu.memory_space<vmem>>, vector<8x16xf32>
    %c0_1 = arith.constant 0 : index
    %c0_2 = arith.constant 0 : index
    %1 = vector.load %arg2[%c0_1, %c0_2] : memref<16x128xf32, #tpu.memory_space<vmem>>, vector<16x128xf32>
    %cst = arith.constant dense<0.000000e+00> : vector<8x128xf32>
    %2 = tpu.matmul %0, %1, %cst {dimension_numbers = #tpu.dot_dimension_numbers<[1], [0], [0], [1], [0, 0, 1, 1], [], []>} : vector<8x16xf32>, vector<16x128xf32>, vector<8x128xf32> -> vector<8x128xf32>
    %c0_3 = arith.constant 0 : index
    %c0_4 = arith.constant 0 : index
    %3 = vector.load %arg3[%c0_3, %c0_4] : memref<1x128xf32, #tpu.memory_space<vmem>>, vector<1x128xf32>
    %4 = vector.broadcast %3 : vector<1x128xf32> to vector<8x128xf32>
    %5 = arith.addf %2, %4 : vector<8x128xf32>
    %cst_5 = arith.constant 0.000000e+00 : f32
    %6 = vector.broadcast %cst_5 : f32 to vector<8x128xf32>
    %7 = arith.maximumf %5, %6 : vector<8x128xf32>
    %c0_6 = arith.constant 0 : index
    %c0_7 = arith.constant 0 : index
    %8 = vector.load %arg4[%c0_6, %c0_7] : memref<128x8xf32, #tpu.memory_space<vmem>>, vector<128x8xf32>
    %cst_8 = arith.constant dense<0.000000e+00> : vector<8x8xf32>
    %9 = tpu.matmul %7, %8, %cst_8 {dimension_numbers = #tpu.dot_dimension_numbers<[1], [0], [0], [1], [0, 0, 1, 1], [], []>} : vector<8x128xf32>, vector<128x8xf32>, vector<8x8xf32> -> vector<8x8xf32>
    %c0_9 = arith.constant 0 : index
    %c0_10 = arith.constant 0 : index
    %10 = vector.load %arg5[%c0_9, %c0_10] : memref<1x8xf32, #tpu.memory_space<vmem>>, vector<1x8xf32>
    %11 = vector.broadcast %10 : vector<1x8xf32> to vector<8x8xf32>
    %12 = arith.addf %9, %11 : vector<8x8xf32>
    %13 = math.tanh %12 : vector<8x8xf32>
    %c0_11 = arith.constant 0 : index
    %c0_12 = arith.constant 0 : index
    %14 = vector.load %arg6[%c0_11, %c0_12] : memref<8x8xf32, #tpu.memory_space<vmem>>, vector<8x8xf32>
    tpu.vector_store %arg6[%c0_11, %c0_12], %13 {strides = array<i32>} : memref<8x8xf32, #tpu.memory_space<vmem>>, vector<8x8xf32>,
    return
  }
  func.func @transform_0(%arg0: i32) -> (i32, i32) {
    %c0_i32 = arith.constant 0 : i32
    %c0_i32_0 = arith.constant 0 : i32
    return %arg0, %c0_i32 : i32, i32
  }
  func.func @transform_1(%arg0: i32) -> (i32, i32) {
    %c0_i32 = arith.constant 0 : i32
    %c0_i32_0 = arith.constant 0 : i32
    %c0_i32_1 = arith.constant 0 : i32
    return %c0_i32, %c0_i32_0 : i32, i32
  }
  func.func @transform_2(%arg0: i32) -> (i32, i32) {
    %c0_i32 = arith.constant 0 : i32
    %c0_i32_0 = arith.constant 0 : i32
    %c0_i32_1 = arith.constant 0 : i32
    return %c0_i32, %c0_i32_0 : i32, i32
  }
  func.func @transform_3(%arg0: i32) -> (i32, i32) {
    %c0_i32 = arith.constant 0 : i32
    %c0_i32_0 = arith.constant 0 : i32
    %c0_i32_1 = arith.constant 0 : i32
    return %c0_i32, %c0_i32_0 : i32, i32
  }
  func.func @transform_4(%arg0: i32) -> (i32, i32) {
    %c0_i32 = arith.constant 0 : i32
    %c0_i32_0 = arith.constant 0 : i32
    %c0_i32_1 = arith.constant 0 : i32
    return %c0_i32, %c0_i32_0 : i32, i32
  }
  func.func @transform_5(%arg0: i32) -> (i32, i32) {
    %c0_i32 = arith.constant 0 : i32
    %c0_i32_0 = arith.constant 0 : i32
    return %arg0, %c0_i32 : i32, i32
  }
}

</mosaic_0001>

<bundles_post_ra>
// kernel: delta_estimator_mlp.1
= control target key start
LH: loop header
LB: loop body
LE: loop exit
PB: predicated region body
PF: predicated region fallthrough
CT: control target
= control target key end

     0   :  { %v338_v2 = vmov 0.0|0.0   ;;  %vm339_vm0 = vmmov 0   ;;  %v340_v4 = vmov 0.0   ;;  %vm31_vm1 = vcmask 130048   ;;  %s447_s0 = inlined_call_operand.vmem [shape: f32[8,16], index: 0, kind: input, shape index: {}]   ;;  %s448_s1 = inlined_call_operand.vmem [shape: f32[16,128], index: 1, kind: input, shape index: {}]   ;;  %s449_s2 = inlined_call_operand.vmem [shape: f32[1,128], index: 2, kind: input, shape index: {}]   ;;  %s450_s3 = inlined_call_operand.vmem [shape: f32[128,8], index: 3, kind: input, shape index: {}]   ;;  %s451_s4 = inlined_call_operand.vmem [shape: f32[1,8], index: 4, kind: input, shape index: {}]   ;;  %s452_s5 = inlined_call_operand.hbm [shape: f32[8,8], index: 5, kind: output, shape index: {}]  }
   0x1   :  { %v22_v0 = vld [vmem:[%s448_s1] sm:$0xff]  ;;  %v23_v1 = vld [vmem:[%s448_s1 + $0x8] sm:$0xff]  ;;  %281 = vmatprep.subr.bf16.mxu0 %v338_v2  ;;  %243 = vmatprep.mubr.msk.f32.mxu0 %vm339_vm0, %v340_v4  ;;  %v108_v7 = vld [vmem:[%s450_s3 + $0x10] sm:$0xff] }
   0x2   :  { %v282_v3 = vpack.c.bf16 %v23_v1, %v22_v0  ;;  %v106_v5 = vld [vmem:[%s450_s3] sm:$0xff]  ;;  %v107_v6 = vld [vmem:[%s450_s3 + $0x8] sm:$0xff]  ;;  %284 = vmatprep.subr.bf16.mxu1 %v338_v2  ;;  %v109_v9 = vld [vmem:[%s450_s3 + $0x18] sm:$0xff]  ;;  %278 = vmatprep.mubr.msk.f32.mxu1 %vm339_vm0, %v340_v4 }
   0x3   :  { %v285_v8 = vpack.c.bf16 %v107_v6, %v106_v5  ;;  %v21_v10 = vld [vmem:[%s447_s0] sm:$0xff]  ;;  %v288_v11 = vpack.c.bf16 %v109_v9, %v108_v7  ;;  %v111_v13 = vld [vmem:[%s450_s3 + $0x28] sm:$0xff] }
   0x4   :  { %283 = vmatpush3.bf16.msra.mxu0 %v282_v3  ;;  %v110_v12 = vld [vmem:[%s450_s3 + $0x20] sm:$0xff] }
   0x5   :  { %286 = vmatpush3.bf16.msra.mxu1 %v285_v8 }
   0x6   :  { %287 = vmatprep.subr.bf16.mxu1 %v338_v2 }
   0x7   :  { %244 = vmatmul.mubr.msk.f32.vlgmr.msra.gmra.mrb[0].mxu0 %vm31_vm1, %v21_v10 }
   0x8   :  { %10 = vsyncpa [#allocation3], 0  ;;  %v291_v14 = vpack.c.bf16 %v111_v13, %v110_v12  ;;  %v112_v15 = vld [vmem:[%s450_s3 + $0x30] sm:$0xff]  ;;  %v113_v16 = vld [vmem:[%s450_s3 + $0x38] sm:$0xff]  ;;  %vm200_vm2 = vcmask 64512  }
   0x9   :  { %289 = vmatpush3.bf16.msra.mxu1 %v288_v11  ;;  %v294_v17 = vpack.c.bf16 %v113_v16, %v112_v15  ;;  %v114_v18 = vld [vmem:[%s450_s3 + $0x40] sm:$0xff]  ;;  %v115_v19 = vld [vmem:[%s450_s3 + $0x48] sm:$0xff]  ;;  %v116_v21 = vld [vmem:[%s450_s3 + $0x50] sm:$0xff] }
   0xa   :  { %290 = vmatprep.subr.bf16.mxu1 %v338_v2  ;;  %v297_v20 = vpack.c.bf16 %v115_v19, %v114_v18  ;;  %v117_v22 = vld [vmem:[%s450_s3 + $0x58] sm:$0xff]  ;;  %v118_v24 = vld [vmem:[%s450_s3 + $0x60] sm:$0xff]  ;;  %v119_v25 = vld [vmem:[%s450_s3 + $0x68] sm:$0xff] }
   0xb   :  { %v300_v23 = vpack.c.bf16 %v117_v22, %v116_v21  ;;  %v303_v26 = vpack.c.bf16 %v119_v25, %v118_v24  ;;  %v120_v27 = vld [vmem:[%s450_s3 + $0x70] sm:$0xff]  ;;  %v121_v28 = vld [vmem:[%s450_s3 + $0x78] sm:$0xff]  ;;  %v216_v30 = vld [vmem:[%s449_s2] ss:$0 sm:$0xff]  ;;  %s341_s3 = smov [#allocation2]  }
   0xc   :  { %v306_v29 = vpack.c.bf16 %v121_v28, %v120_v27  ;;  %v218_v35 = vld [vmem:[%s451_s4] ss:$0 sm:$0xff]  ;;  %s208_s7 = sshll.u32 %s341_s3, 4  ;;  %s209_s7 = int_to_ptr.vmem [resolvable:$true] %s208_s7 }
   0xd   :  { %292 = vmatpush3.bf16.msra.mxu1 %v291_v14  ;;  %s314_s2 = scalar_lea.vmem %s209_s7, 128  ;;  %p319_p1 = scmp.lt.s32.totalorder %s209_s7, %s209_s7 }
   0xe   :  { %293 = vmatprep.subr.bf16.mxu1 %v338_v2  ;;  %p315_p0 = scmp.ne.s32.totalorder %s209_s7, %s314_s2  ;;  %p320_p2 = scmp.lt.s32.totalorder %s314_s2, %s314_s2 }
  0x10   :  { %p321_p3 = por %p320_p2, %p319_p1 }
  0x11   :  { %295 = vmatpush3.bf16.msra.mxu1 %v294_v17 }
  0x12   :  { %296 = vmatprep.subr.bf16.mxu1 %v338_v2  ;;  %p322_p4 = pnand %p321_p3, %p315_p0 }
  0x15   :  { %298 = vmatpush3.bf16.msra.mxu1 %v297_v20 }
  0x16   :  { %299 = vmatprep.subr.bf16.mxu1 %v338_v2 }
  0x19   :  { %301 = vmatpush3.bf16.msra.mxu1 %v300_v23 }
  0x1a   :  { %302 = vmatprep.subr.bf16.mxu1 %v338_v2 }
  0x1d   :  { %304 = vmatpush3.bf16.msra.mxu1 %v303_v26 }
  0x1e   :  { %305 = vmatprep.subr.bf16.mxu1 %v338_v2 }
  0x21   :  { %307 = vmatpush3.bf16.msra.mxu1 %v306_v29 }
  0xda   :  { %v101_v31 = vpop.f32.mrb[0].mxu0 }
  0xdb   :  { %v102_v32 = vadd.f32 %v216_v30, %v101_v31  ;;  %v245_v33 = vpop.f32.mrb[1].mxu0 }
  0xdd   :  { %v105_v34 = vmax.f32 %v102_v32, 0.0 }
  0xdf   :  { %279 = vmatmul.mubr.f32.vlgmr.msra.gmra.mrb[0].mxu1 %v105_v34 }
 0x1b2   :  { %v195_v36 = vpop.f32.mrb[0].mxu1 }
 0x1b3   :  { %v196_v37 = vadd.f32 %v218_v35, %v195_v36  ;;  %v280_v38 = vpop.f32.mrb[1].mxu1 }
 0x1b5   :  { %312 = vtanh.f32 %v196_v37 }
 0x1bf   :  { %v313_v39 = vpop.eup %312 }
 0x1c0   :  { %201 = vst.msk [vmem:[#allocation2] sm:$0xff] %vm200_vm2, %v313_v39 }
 0x1c1   :  { %325 = shalt.err (!%p322_p4)
}
 0x1c2   :  { %s326_s4 = scalar_lea.hbm %s452_s5, 128 }
 0x1c3   :  { %p327_p5 = scmp.ne.s32.totalorder %s452_s5, %s326_s4  ;;  %p330_p6 = scmp.lt.u32.totalorder %s326_s4, %s452_s5 }
 0x1c5   :  { %p332_p7 = pnand %p330_p6, %p327_p5 }
 0x1c7   :  { %335 = shalt.err (!%p332_p7)
}
 0x1c8   :  { %211 = dma.vmem_to_hbm [thread:$0]  %s209_s7, 128, %s452_s5, [#allocation3]  }
 0x1c9   :  { %336 = dma.done.wait [#allocation3], 128  }
 0x1ca   :  { %337 = vsyncadd [#allocation3], 4294967168 }
 0x1cb   :  { %215 = vsyncpa [#allocation3], 1 }

</bundles_post_ra>
